<compile_context>
chip_gen: v7x
topology: tpu7x:2x2x1
jax: 0.10.0
libtpu: 0.0.40
codegen_flags: <defaults>
</compile_context>

<pallas_src>
import functools
import math

import numpy as np
import jax
import jax.numpy as jnp
from jax import lax
from jax.experimental import pallas as pl
from jax.experimental.pallas import tpu as pltpu

# 3x3 taps in row-major (ky, kx) order -> (dy, dx) offsets; this order must match the
# reshape of the depthwise weights (2C, 1, 3, 3) -> (2C, 9).
_TAPS = tuple((dy, dx) for dy in (-1, 0, 1) for dx in (-1, 0, 1))
_CENTER = 4  # tap index of (dy, dx) == (0, 0), always inside the image


def _spatial_attention_kernel(x_ref, mavg_ref, nbias_ref, mw_ref, wpw_ref, b_ref,
                              o_ref, *, width, nb, c):
    # x_ref    : (NB*C, P)      NB batch elems x C channels on sublanes, H*W on lanes
    # mavg_ref : (9, P)         per-tap border mask * 1/(# valid taps)   (avg pool)
    # nbias_ref: (9, P)         per-tap additive bias: 0 valid / -1e30 border (max pool)
    # mw_ref   : (9, 2*NB*C, P) per-tap border mask * per-row depthwise 3x3 weight
    # wpw_ref  : (C, 2C)        1x1 conv weights [out_ch, in_ch]
    # b_ref    : (C, 1)         fused bias: b_pw + W_pw @ b_dw
    # o_ref    : (NB*C, P)
    P = x_ref.shape[-1]
    f32 = jnp.float32
    x = x_ref[...].astype(f32)                           # (NB*C, P)

    def shifted(v, s):
        # shifted[r, p] = v[r, p + s]; wrap-around lanes are neutralized by masks/biases.
        return v if s == 0 else pltpu.roll(v, shift=(-s) % P, axis=1)

    # ---- phase 1: 3x3 avg + max pooling via lane rolls (XLU) --------------------
    ssum = x * mavg_ref[_CENTER:_CENTER + 1, :]          # center tap, divisor prefolded
    mx = x                                               # center tap always valid
    for t, (dy, dx) in enumerate(_TAPS):
        if t == _CENTER:
            continue
        xs = shifted(x, dy * width + dx)
        ssum = ssum + xs * mavg_ref[t:t + 1, :]          # avg: mask*inv_cnt prefolded
        mx = jnp.maximum(mx, xs + nbias_ref[t:t + 1, :]) # max: additive border bias

    # ---- phase 2: depthwise 3x3 conv on the stacked (avg, max) tensor ------------
    # torch.cat([avg, max], dim=-3) is one sublane concat, so each tap needs a single
    # roll over the full (2*NB*C, P) vregs; mask*weight products are prefolded in mw.
    stacked = jnp.concatenate([ssum, mx], axis=0)        # (2*NB*C, P)
    dw = stacked * mw_ref[_CENTER]
    for t, (dy, dx) in enumerate(_TAPS):
        if t == _CENTER:
            continue
        dw = dw + shifted(stacked, dy * width + dx) * mw_ref[t]

    # ---- phase 3: 1x1 conv (VPU broadcast FMAs; K = 2C far too small for MXU) ----
    wpw = wpw_ref[...].astype(f32)                       # (C, 2C)
    b = b_ref[...].astype(f32)                           # (C, 1)
    att_parts = []
    for n in range(nb):
        att_n = b + wpw[:, 0:1] * dw[n * c:n * c + 1, :]            # k = 0 (avg chan 0)
        for k in range(1, 2 * c):
            row = n * c + k if k < c else nb * c + n * c + (k - c)  # avg rows, then max
            att_n = att_n + wpw[:, k:k + 1] * dw[row:row + 1, :]
        att_parts.append(att_n)
    att = att_parts[0] if nb == 1 else jnp.concatenate(att_parts, axis=0)

    # ---- sigmoid gate -------------------------------------------------------------
    o_ref[...] = (x * jax.nn.sigmoid(att)).astype(o_ref.dtype)


@jax.jit
def spatial_attention(x_nchw, w_dw, b_dw, w_pw, b_pw):
    """x: (N,C,H,W); w_dw: (2C,1,3,3); b_dw: (2C,); w_pw: (C,2C,1,1); b_pw: (C,)."""
    N, C, H, W = x_nchw.shape
    C2 = 2 * C
    P = H * W
    # Group NB batch elements per grid step so NB*C fills the 8 sublanes (NB=2 for C=4).
    nb = math.gcd(N, max(1, 8 // C)) if C <= 8 else 1
    rows = nb * C

    # NCHW -> (N*C, H*W): free row-major reshape; H*W is lane-dense (256 here, a multiple
    # of 128 so output stores are full vst; pad P up to a multiple of 128 for general H,W).
    x = x_nchw.reshape(N * C, P)

    # Data-independent border masks and derived constants (host-side numpy).
    hh = np.repeat(np.arange(H), W)[None, :]             # (1, P) row index
    ww = np.tile(np.arange(W), H)[None, :]               # (1, P) col index
    masks = np.concatenate(
        [((hh + dy >= 0) & (hh + dy < H) & (ww + dx >= 0) & (ww + dx < W))
         for dy, dx in _TAPS], axis=0).astype(np.float32)                   # (9, P)
    inv_cnt = (1.0 / masks.sum(axis=0, keepdims=True)).astype(np.float32)   # (1, P)
    m_avg = (masks * inv_cnt).astype(np.float32)                            # (9, P)
    neg_bias = np.where(masks > 0, 0.0, -1e30).astype(np.float32)           # (9, P)

    # Depthwise 3x3 weights -> one row per (batch-in-group, channel, avg/max half), then
    # pre-multiplied by the border masks: mw[t, r, p] = masks[t, p] * w_row[r, t].
    wdw = w_dw.reshape(C2, 9).astype(jnp.float32)                # [channel, tap]
    wdw_rows = jnp.concatenate([jnp.tile(wdw[:C], (nb, 1)),      # avg rows
                                jnp.tile(wdw[C:], (nb, 1))], axis=0)        # (2*rows, 9)
    mw = jnp.asarray(masks)[:, None, :] * wdw_rows.T[:, :, None]            # (9,2*rows,P)

    wpw = w_pw.reshape(C, C2).astype(jnp.float32)                # [out_ch, in_ch]
    # Fold the depthwise bias through the 1x1 conv: b_eff = b_pw + W_pw @ b_dw.
    bias = (b_pw.astype(jnp.float32) + wpw @ b_dw.astype(jnp.float32)).reshape(C, 1)

    kernel = functools.partial(_spatial_attention_kernel, width=W, nb=nb, c=C)
    out = pl.pallas_call(
        kernel,
        out_shape=jax.ShapeDtypeStruct((N * C, P), x_nchw.dtype),
        grid=(N // nb,),   # one step at demo shapes; shards over v7x's 2 TCs for big N
        in_specs=[
            pl.BlockSpec((rows, P), lambda g: (g, 0)),
            pl.BlockSpec((9, P), lambda g: (0, 0)),
            pl.BlockSpec((9, P), lambda g: (0, 0)),
            pl.BlockSpec((9, 2 * rows, P), lambda g: (0, 0, 0)),
            pl.BlockSpec((C, C2), lambda g: (0, 0)),
            pl.BlockSpec((C, 1), lambda g: (0, 0)),
        ],
        out_specs=pl.BlockSpec((rows, P), lambda g: (g, 0)),
        compiler_params=pltpu.CompilerParams(
            dimension_semantics=("parallel",)),
    )(x, jnp.asarray(m_avg), jnp.asarray(neg_bias), mw, wpw, bias)
    return out.reshape(N, C, H, W)


def reference(x, w_dw, b_dw, w_pw, b_pw):
    """Pure-JAX reference (NCHW), mirroring the PyTorch module semantics."""
    N, C, H, W = x.shape
    pad = [(0, 0), (0, 0), (1, 1), (1, 1)]
    ssum = lax.reduce_window(x, 0.0, lax.add, (1, 1, 3, 3), (1, 1, 1, 1), pad)
    cnt = lax.reduce_window(jnp.ones_like(x), 0.0, lax.add, (1, 1, 3, 3), (1, 1, 1, 1), pad)
    f_avg = ssum / cnt                                   # count_include_pad=False
    f_max = lax.reduce_window(x, -jnp.inf, lax.max, (1, 1, 3, 3), (1, 1, 1, 1), pad)
    f = jnp.concatenate([f_avg, f_max], axis=1)          # (N, 2C, H, W)
    dw = lax.conv_general_dilated(f, w_dw, (1, 1), [(1, 1), (1, 1)],
                                  dimension_numbers=('NCHW', 'OIHW', 'NCHW'),
                                  feature_group_count=2 * C)
    dw = dw + b_dw.reshape(1, 2 * C, 1, 1)
    pw = lax.conv_general_dilated(dw, w_pw, (1, 1), [(0, 0), (0, 0)],
                                  dimension_numbers=('NCHW', 'OIHW', 'NCHW'))
    pw = pw + b_pw.reshape(1, C, 1, 1)
    return x * jax.nn.sigmoid(pw)


if __name__ == "__main__":
    key = jax.random.PRNGKey(0)
    k1, k2, k3, k4, k5 = jax.random.split(key, 5)
    N, C, H, W = 2, 4, 16, 16

    x = jax.random.normal(k1, (N, C, H, W), jnp.float32)
    # deterministic synthetic parameters (shapes from the module's __init__)
    w_dw = jax.random.normal(k2, (2 * C, 1, 3, 3), jnp.float32) * 0.3     # depthwise conv
    b_dw = jax.random.normal(k3, (2 * C,), jnp.float32) * 0.1
    w_pw = jax.random.normal(k4, (C, 2 * C, 1, 1), jnp.float32) * 0.3     # 1x1 conv
    b_pw = jax.random.normal(k5, (C,), jnp.float32) * 0.1

    out = spatial_attention(x, w_dw, b_dw, w_pw, b_pw)
    out = jax.block_until_ready(out)

    ref = reference(x, w_dw, b_dw, w_pw, b_pw)
    assert out.shape == x.shape
    err = float(jnp.max(jnp.abs(out - ref)))
    assert jnp.allclose(out, ref, rtol=1e-4, atol=1e-4), f"max abs err {err}"
    print("KERNEL_OK")
</pallas_src>

<mosaic_0001>
module attributes {stable_mosaic.version = 11 : i64} {
  func.func @_spatial_attention_kernel(%arg0: i32, %arg1: memref<8x256xf32, #tpu.memory_space<vmem>>, %arg2: memref<9x256xf32, #tpu.memory_space<vmem>>, %arg3: memref<9x256xf32, #tpu.memory_space<vmem>>, %arg4: memref<9x16x256xf32, #tpu.memory_space<vmem>>, %arg5: memref<4x8xf32, #tpu.memory_space<vmem>>, %arg6: memref<4x1xf32, #tpu.memory_space<vmem>>, %arg7: memref<8x256xf32, #tpu.memory_space<vmem>>) attributes {dimension_semantics = [#tpu.dimension_semantics<parallel>], iteration_bounds = array<i64: 1>, scalar_prefetch = 0 : i64, scratch_operands = 0 : i64, tpu.core_type = #tpu.core_type<tc>, window_params = [{transform_indices = @transform_0, window_bounds = array<i64: 8, 256>}, {pipeline_mode = #tpu.pipeline_mode<synchronous>, transform_indices = @transform_1, window_bounds = array<i64: 9, 256>}, {pipeline_mode = #tpu.pipeline_mode<synchronous>, transform_indices = @transform_2, window_bounds = array<i64: 9, 256>}, {pipeline_mode = #tpu.pipeline_mode<synchronous>, transform_indices = @transform_3, window_bounds = array<i64: 9, 16, 256>}, {pipeline_mode = #tpu.pipeline_mode<synchronous>, transform_indices = @transform_4, window_bounds = array<i64: 4, 8>}, {pipeline_mode = #tpu.pipeline_mode<synchronous>, transform_indices = @transform_5, window_bounds = array<i64: 4, 1>}, {transform_indices = @transform_6, window_bounds = array<i64: 8, 256>}]} {
    %c0 = arith.constant 0 : index
    %c0_0 = arith.constant 0 : index
    %0 = vector.load %arg1[%c0, %c0_0] : memref<8x256xf32, #tpu.memory_space<vmem>>, vector<8x256xf32>
    %c4 = arith.constant 4 : index
    %c0_1 = arith.constant 0 : index
    %1 = vector.load %arg2[%c4, %c0_1] : memref<9x256xf32, #tpu.memory_space<vmem>>, vector<1x256xf32>
    %2 = vector.broadcast %1 : vector<1x256xf32> to vector<8x256xf32>
    %3 = arith.mulf %0, %2 : vector<8x256xf32>
    %c17_i32 = arith.constant 17 : i32
    %4 = tpu.dynamic_rotate %0 by %c17_i32 dim 1 : vector<8x256xf32>, i32 -> vector<8x256xf32>
    %c0_2 = arith.constant 0 : index
    %c0_3 = arith.constant 0 : index
    %5 = vector.load %arg2[%c0_2, %c0_3] : memref<9x256xf32, #tpu.memory_space<vmem>>, vector<1x256xf32>
    %6 = vector.broadcast %5 : vector<1x256xf32> to vector<8x256xf32>
    %7 = arith.mulf %4, %6 : vector<8x256xf32>
    %8 = arith.addf %3, %7 : vector<8x256xf32>
    %c0_4 = arith.constant 0 : index
    %c0_5 = arith.constant 0 : index
    %9 = vector.load %arg3[%c0_4, %c0_5] : memref<9x256xf32, #tpu.memory_space<vmem>>, vector<1x256xf32>
    %10 = vector.broadcast %9 : vector<1x256xf32> to vector<8x256xf32>
    %11 = arith.addf %4, %10 : vector<8x256xf32>
    %12 = arith.maximumf %0, %11 : vector<8x256xf32>
    %c16_i32 = arith.constant 16 : i32
    %13 = tpu.dynamic_rotate %0 by %c16_i32 dim 1 : vector<8x256xf32>, i32 -> vector<8x256xf32>
    %c1 = arith.constant 1 : index
    %c0_6 = arith.constant 0 : index
    %14 = vector.load %arg2[%c1, %c0_6] : memref<9x256xf32, #tpu.memory_space<vmem>>, vector<1x256xf32>
    %15 = vector.broadcast %14 : vector<1x256xf32> to vector<8x256xf32>
    %16 = arith.mulf %13, %15 : vector<8x256xf32>
    %17 = arith.addf %8, %16 : vector<8x256xf32>
    %c1_7 = arith.constant 1 : index
    %c0_8 = arith.constant 0 : index
    %18 = vector.load %arg3[%c1_7, %c0_8] : memref<9x256xf32, #tpu.memory_space<vmem>>, vector<1x256xf32>
    %19 = vector.broadcast %18 : vector<1x256xf32> to vector<8x256xf32>
    %20 = arith.addf %13, %19 : vector<8x256xf32>
    %21 = arith.maximumf %12, %20 : vector<8x256xf32>
    %c15_i32 = arith.constant 15 : i32
    %22 = tpu.dynamic_rotate %0 by %c15_i32 dim 1 : vector<8x256xf32>, i32 -> vector<8x256xf32>
    %c2 = arith.constant 2 : index
    %c0_9 = arith.constant 0 : index
    %23 = vector.load %arg2[%c2, %c0_9] : memref<9x256xf32, #tpu.memory_space<vmem>>, vector<1x256xf32>
    %24 = vector.broadcast %23 : vector<1x256xf32> to vector<8x256xf32>
    %25 = arith.mulf %22, %24 : vector<8x256xf32>
    %26 = arith.addf %17, %25 : vector<8x256xf32>
    %c2_10 = arith.constant 2 : index
    %c0_11 = arith.constant 0 : index
    %27 = vector.load %arg3[%c2_10, %c0_11] : memref<9x256xf32, #tpu.memory_space<vmem>>, vector<1x256xf32>
    %28 = vector.broadcast %27 : vector<1x256xf32> to vector<8x256xf32>
    %29 = arith.addf %22, %28 : vector<8x256xf32>
    %30 = arith.maximumf %21, %29 : vector<8x256xf32>
    %c1_i32 = arith.constant 1 : i32
    %31 = tpu.dynamic_rotate %0 by %c1_i32 dim 1 : vector<8x256xf32>, i32 -> vector<8x256xf32>
    %c3 = arith.constant 3 : index
    %c0_12 = arith.constant 0 : index
    %32 = vector.load %arg2[%c3, %c0_12] : memref<9x256xf32, #tpu.memory_space<vmem>>, vector<1x256xf32>
    %33 = vector.broadcast %32 : vector<1x256xf32> to vector<8x256xf32>
    %34 = arith.mulf %31, %33 : vector<8x256xf32>
    %35 = arith.addf %26, %34 : vector<8x256xf32>
    %c3_13 = arith.constant 3 : index
    %c0_14 = arith.constant 0 : index
    %36 = vector.load %arg3[%c3_13, %c0_14] : memref<9x256xf32, #tpu.memory_space<vmem>>, vector<1x256xf32>
    %37 = vector.broadcast %36 : vector<1x256xf32> to vector<8x256xf32>
    %38 = arith.addf %31, %37 : vector<8x256xf32>
    %39 = arith.maximumf %30, %38 : vector<8x256xf32>
    %c255_i32 = arith.constant 255 : i32
    %40 = tpu.dynamic_rotate %0 by %c255_i32 dim 1 : vector<8x256xf32>, i32 -> vector<8x256xf32>
    %c5 = arith.constant 5 : index
    %c0_15 = arith.constant 0 : index
    %41 = vector.load %arg2[%c5, %c0_15] : memref<9x256xf32, #tpu.memory_space<vmem>>, vector<1x256xf32>
    %42 = vector.broadcast %41 : vector<1x256xf32> to vector<8x256xf32>
    %43 = arith.mulf %40, %42 : vector<8x256xf32>
    %44 = arith.addf %35, %43 : vector<8x256xf32>
    %c5_16 = arith.constant 5 : index
    %c0_17 = arith.constant 0 : index
    %45 = vector.load %arg3[%c5_16, %c0_17] : memref<9x256xf32, #tpu.memory_space<vmem>>, vector<1x256xf32>
    %46 = vector.broadcast %45 : vector<1x256xf32> to vector<8x256xf32>
    %47 = arith.addf %40, %46 : vector<8x256xf32>
    %48 = arith.maximumf %39, %47 : vector<8x256xf32>
    %c241_i32 = arith.constant 241 : i32
    %49 = tpu.dynamic_rotate %0 by %c241_i32 dim 1 : vector<8x256xf32>, i32 -> vector<8x256xf32>
    %c6 = arith.constant 6 : index
    %c0_18 = arith.constant 0 : index
    %50 = vector.load %arg2[%c6, %c0_18] : memref<9x256xf32, #tpu.memory_space<vmem>>, vector<1x256xf32>
    %51 = vector.broadcast %50 : vector<1x256xf32> to vector<8x256xf32>
    %52 = arith.mulf %49, %51 : vector<8x256xf32>
    %53 = arith.addf %44, %52 : vector<8x256xf32>
    %c6_19 = arith.constant 6 : index
    %c0_20 = arith.constant 0 : index
    %54 = vector.load %arg3[%c6_19, %c0_20] : memref<9x256xf32, #tpu.memory_space<vmem>>, vector<1x256xf32>
    %55 = vector.broadcast %54 : vector<1x256xf32> to vector<8x256xf32>
    %56 = arith.addf %49, %55 : vector<8x256xf32>
    %57 = arith.maximumf %48, %56 : vector<8x256xf32>
    %c240_i32 = arith.constant 240 : i32
    %58 = tpu.dynamic_rotate %0 by %c240_i32 dim 1 : vector<8x256xf32>, i32 -> vector<8x256xf32>
    %c7 = arith.constant 7 : index
    %c0_21 = arith.constant 0 : index
    %59 = vector.load %arg2[%c7, %c0_21] : memref<9x256xf32, #tpu.memory_space<vmem>>, vector<1x256xf32>
    %60 = vector.broadcast %59 : vector<1x256xf32> to vector<8x256xf32>
    %61 = arith.mulf %58, %60 : vector<8x256xf32>
    %62 = arith.addf %53, %61 : vector<8x256xf32>
    %c7_22 = arith.constant 7 : index
    %c0_23 = arith.constant 0 : index
    %63 = vector.load %arg3[%c7_22, %c0_23] : memref<9x256xf32, #tpu.memory_space<vmem>>, vector<1x256xf32>
    %64 = vector.broadcast %63 : vector<1x256xf32> to vector<8x256xf32>
    %65 = arith.addf %58, %64 : vector<8x256xf32>
    %66 = arith.maximumf %57, %65 : vector<8x256xf32>
    %c239_i32 = arith.constant 239 : i32
    %67 = tpu.dynamic_rotate %0 by %c239_i32 dim 1 : vector<8x256xf32>, i32 -> vector<8x256xf32>
    %c8 = arith.constant 8 : index
    %c0_24 = arith.constant 0 : index
    %68 = vector.load %arg2[%c8, %c0_24] : memref<9x256xf32, #tpu.memory_space<vmem>>, vector<1x256xf32>
    %69 = vector.broadcast %68 : vector<1x256xf32> to vector<8x256xf32>
    %70 = arith.mulf %67, %69 : vector<8x256xf32>
    %71 = arith.addf %62, %70 : vector<8x256xf32>
    %c8_25 = arith.constant 8 : index
    %c0_26 = arith.constant 0 : index
    %72 = vector.load %arg3[%c8_25, %c0_26] : memref<9x256xf32, #tpu.memory_space<vmem>>, vector<1x256xf32>
    %73 = vector.broadcast %72 : vector<1x256xf32> to vector<8x256xf32>
    %74 = arith.addf %67, %73 : vector<8x256xf32>
    %75 = arith.maximumf %66, %74 : vector<8x256xf32>
    %76 = tpu.concatenate %71, %75 in 0 : vector<8x256xf32>, vector<8x256xf32> -> vector<16x256xf32>
    %c4_27 = arith.constant 4 : index
    %c0_28 = arith.constant 0 : index
    %c0_29 = arith.constant 0 : index
    %77 = vector.load %arg4[%c4_27, %c0_28, %c0_29] : memref<9x16x256xf32, #tpu.memory_space<vmem>>, vector<1x16x256xf32>
    %78 = vector.shape_cast %77 : vector<1x16x256xf32> to vector<16x256xf32>
    %79 = arith.mulf %76, %78 : vector<16x256xf32>
    %c17_i32_30 = arith.constant 17 : i32
    %80 = tpu.dynamic_rotate %76 by %c17_i32_30 dim 1 : vector<16x256xf32>, i32 -> vector<16x256xf32>
    %c0_31 = arith.constant 0 : index
    %c0_32 = arith.constant 0 : index
    %c0_33 = arith.constant 0 : index
    %81 = vector.load %arg4[%c0_31, %c0_32, %c0_33] : memref<9x16x256xf32, #tpu.memory_space<vmem>>, vector<1x16x256xf32>
    %82 = vector.shape_cast %81 : vector<1x16x256xf32> to vector<16x256xf32>
    %83 = arith.mulf %80, %82 : vector<16x256xf32>
    %84 = arith.addf %79, %83 : vector<16x256xf32>
    %c16_i32_34 = arith.constant 16 : i32
    %85 = tpu.dynamic_rotate %76 by %c16_i32_34 dim 1 : vector<16x256xf32>, i32 -> vector<16x256xf32>
    %c1_35 = arith.constant 1 : index
    %c0_36 = arith.constant 0 : index
    %c0_37 = arith.constant 0 : index
    %86 = vector.load %arg4[%c1_35, %c0_36, %c0_37] : memref<9x16x256xf32, #tpu.memory_space<vmem>>, vector<1x16x256xf32>
    %87 = vector.shape_cast %86 : vector<1x16x256xf32> to vector<16x256xf32>
    %88 = arith.mulf %85, %87 : vector<16x256xf32>
    %89 = arith.addf %84, %88 : vector<16x256xf32>
    %c15_i32_38 = arith.constant 15 : i32
    %90 = tpu.dynamic_rotate %76 by %c15_i32_38 dim 1 : vector<16x256xf32>, i32 -> vector<16x256xf32>
    %c2_39 = arith.constant 2 : index
    %c0_40 = arith.constant 0 : index
    %c0_41 = arith.constant 0 : index
    %91 = vector.load %arg4[%c2_39, %c0_40, %c0_41] : memref<9x16x256xf32, #tpu.memory_space<vmem>>, vector<1x16x256xf32>
    %92 = vector.shape_cast %91 : vector<1x16x256xf32> to vector<16x256xf32>
    %93 = arith.mulf %90, %92 : vector<16x256xf32>
    %94 = arith.addf %89, %93 : vector<16x256xf32>
    %c1_i32_42 = arith.constant 1 : i32
    %95 = tpu.dynamic_rotate %76 by %c1_i32_42 dim 1 : vector<16x256xf32>, i32 -> vector<16x256xf32>
    %c3_43 = arith.constant 3 : index
    %c0_44 = arith.constant 0 : index
    %c0_45 = arith.constant 0 : index
    %96 = vector.load %arg4[%c3_43, %c0_44, %c0_45] : memref<9x16x256xf32, #tpu.memory_space<vmem>>, vector<1x16x256xf32>
    %97 = vector.shape_cast %96 : vector<1x16x256xf32> to vector<16x256xf32>
    %98 = arith.mulf %95, %97 : vector<16x256xf32>
    %99 = arith.addf %94, %98 : vector<16x256xf32>
    %c255_i32_46 = arith.constant 255 : i32
    %100 = tpu.dynamic_rotate %76 by %c255_i32_46 dim 1 : vector<16x256xf32>, i32 -> vector<16x256xf32>
    %c5_47 = arith.constant 5 : index
    %c0_48 = arith.constant 0 : index
    %c0_49 = arith.constant 0 : index
    %101 = vector.load %arg4[%c5_47, %c0_48, %c0_49] : memref<9x16x256xf32, #tpu.memory_space<vmem>>, vector<1x16x256xf32>
    %102 = vector.shape_cast %101 : vector<1x16x256xf32> to vector<16x256xf32>
    %103 = arith.mulf %100, %102 : vector<16x256xf32>
    %104 = arith.addf %99, %103 : vector<16x256xf32>
    %c241_i32_50 = arith.constant 241 : i32
    %105 = tpu.dynamic_rotate %76 by %c241_i32_50 dim 1 : vector<16x256xf32>, i32 -> vector<16x256xf32>
    %c6_51 = arith.constant 6 : index
    %c0_52 = arith.constant 0 : index
    %c0_53 = arith.constant 0 : index
    %106 = vector.load %arg4[%c6_51, %c0_52, %c0_53] : memref<9x16x256xf32, #tpu.memory_space<vmem>>, vector<1x16x256xf32>
    %107 = vector.shape_cast %106 : vector<1x16x256xf32> to vector<16x256xf32>
    %108 = arith.mulf %105, %107 : vector<16x256xf32>
    %109 = arith.addf %104, %108 : vector<16x256xf32>
    %c240_i32_54 = arith.constant 240 : i32
    %110 = tpu.dynamic_rotate %76 by %c240_i32_54 dim 1 : vector<16x256xf32>, i32 -> vector<16x256xf32>
    %c7_55 = arith.constant 7 : index
    %c0_56 = arith.constant 0 : index
    %c0_57 = arith.constant 0 : index
    %111 = vector.load %arg4[%c7_55, %c0_56, %c0_57] : memref<9x16x256xf32, #tpu.memory_space<vmem>>, vector<1x16x256xf32>
    %112 = vector.shape_cast %111 : vector<1x16x256xf32> to vector<16x256xf32>
    %113 = arith.mulf %110, %112 : vector<16x256xf32>
    %114 = arith.addf %109, %113 : vector<16x256xf32>
    %c239_i32_58 = arith.constant 239 : i32
    %115 = tpu.dynamic_rotate %76 by %c239_i32_58 dim 1 : vector<16x256xf32>, i32 -> vector<16x256xf32>
    %c8_59 = arith.constant 8 : index
    %c0_60 = arith.constant 0 : index
    %c0_61 = arith.constant 0 : index
    %116 = vector.load %arg4[%c8_59, %c0_60, %c0_61] : memref<9x16x256xf32, #tpu.memory_space<vmem>>, vector<1x16x256xf32>
    %117 = vector.shape_cast %116 : vector<1x16x256xf32> to vector<16x256xf32>
    %118 = arith.mulf %115, %117 : vector<16x256xf32>
    %119 = arith.addf %114, %118 : vector<16x256xf32>
    %c0_62 = arith.constant 0 : index
    %c0_63 = arith.constant 0 : index
    %120 = vector.load %arg5[%c0_62, %c0_63] : memref<4x8xf32, #tpu.memory_space<vmem>>, vector<4x8xf32>
    %c0_64 = arith.constant 0 : index
    %c0_65 = arith.constant 0 : index
    %121 = vector.load %arg6[%c0_64, %c0_65] : memref<4x1xf32, #tpu.memory_space<vmem>>, vector<4x1xf32>
    %122 = vector.extract_strided_slice %120 {offsets = [0, 0], sizes = [4, 1], strides = [1, 1]} : vector<4x8xf32> to vector<4x1xf32>
    %123 = vector.extract_strided_slice %119 {offsets = [0, 0], sizes = [1, 256], strides = [1, 1]} : vector<16x256xf32> to vector<1x256xf32>
    %124 = vector.broadcast %122 : vector<4x1xf32> to vector<4x256xf32>
    %125 = vector.broadcast %123 : vector<1x256xf32> to vector<4x256xf32>
    %126 = arith.mulf %124, %125 : vector<4x256xf32>
    %127 = vector.broadcast %121 : vector<4x1xf32> to vector<4x256xf32>
    %128 = arith.addf %127, %126 : vector<4x256xf32>
    %129 = vector.extract_strided_slice %120 {offsets = [0, 1], sizes = [4, 1], strides = [1, 1]} : vector<4x8xf32> to vector<4x1xf32>
    %130 = vector.extract_strided_slice %119 {offsets = [1, 0], sizes = [1, 256], strides = [1, 1]} : vector<16x256xf32> to vector<1x256xf32>
    %131 = vector.broadcast %129 : vector<4x1xf32> to vector<4x256xf32>
    %132 = vector.broadcast %130 : vector<1x256xf32> to vector<4x256xf32>
    %133 = arith.mulf %131, %132 : vector<4x256xf32>
    %134 = arith.addf %128, %133 : vector<4x256xf32>
    %135 = vector.extract_strided_slice %120 {offsets = [0, 2], sizes = [4, 1], strides = [1, 1]} : vector<4x8xf32> to vector<4x1xf32>
    %136 = vector.extract_strided_slice %119 {offsets = [2, 0], sizes = [1, 256], strides = [1, 1]} : vector<16x256xf32> to vector<1x256xf32>
    %137 = vector.broadcast %135 : vector<4x1xf32> to vector<4x256xf32>
    %138 = vector.broadcast %136 : vector<1x256xf32> to vector<4x256xf32>
    %139 = arith.mulf %137, %138 : vector<4x256xf32>
    %140 = arith.addf %134, %139 : vector<4x256xf32>
    %141 = vector.extract_strided_slice %120 {offsets = [0, 3], sizes = [4, 1], strides = [1, 1]} : vector<4x8xf32> to vector<4x1xf32>
    %142 = vector.extract_strided_slice %119 {offsets = [3, 0], sizes = [1, 256], strides = [1, 1]} : vector<16x256xf32> to vector<1x256xf32>
    %143 = vector.broadcast %141 : vector<4x1xf32> to vector<4x256xf32>
    %144 = vector.broadcast %142 : vector<1x256xf32> to vector<4x256xf32>
    %145 = arith.mulf %143, %144 : vector<4x256xf32>
    %146 = arith.addf %140, %145 : vector<4x256xf32>
    %147 = vector.extract_strided_slice %120 {offsets = [0, 4], sizes = [4, 1], strides = [1, 1]} : vector<4x8xf32> to vector<4x1xf32>
    %148 = vector.extract_strided_slice %119 {offsets = [8, 0], sizes = [1, 256], strides = [1, 1]} : vector<16x256xf32> to vector<1x256xf32>
    %149 = vector.broadcast %147 : vector<4x1xf32> to vector<4x256xf32>
    %150 = vector.broadcast %148 : vector<1x256xf32> to vector<4x256xf32>
    %151 = arith.mulf %149, %150 : vector<4x256xf32>
    %152 = arith.addf %146, %151 : vector<4x256xf32>
    %153 = vector.extract_strided_slice %120 {offsets = [0, 5], sizes = [4, 1], strides = [1, 1]} : vector<4x8xf32> to vector<4x1xf32>
    %154 = vector.extract_strided_slice %119 {offsets = [9, 0], sizes = [1, 256], strides = [1, 1]} : vector<16x256xf32> to vector<1x256xf32>
    %155 = vector.broadcast %153 : vector<4x1xf32> to vector<4x256xf32>
    %156 = vector.broadcast %154 : vector<1x256xf32> to vector<4x256xf32>
    %157 = arith.mulf %155, %156 : vector<4x256xf32>
    %158 = arith.addf %152, %157 : vector<4x256xf32>
    %159 = vector.extract_strided_slice %120 {offsets = [0, 6], sizes = [4, 1], strides = [1, 1]} : vector<4x8xf32> to vector<4x1xf32>
    %160 = vector.extract_strided_slice %119 {offsets = [10, 0], sizes = [1, 256], strides = [1, 1]} : vector<16x256xf32> to vector<1x256xf32>
    %161 = vector.broadcast %159 : vector<4x1xf32> to vector<4x256xf32>
    %162 = vector.broadcast %160 : vector<1x256xf32> to vector<4x256xf32>
    %163 = arith.mulf %161, %162 : vector<4x256xf32>
    %164 = arith.addf %158, %163 : vector<4x256xf32>
    %165 = vector.extract_strided_slice %120 {offsets = [0, 7], sizes = [4, 1], strides = [1, 1]} : vector<4x8xf32> to vector<4x1xf32>
    %166 = vector.extract_strided_slice %119 {offsets = [11, 0], sizes = [1, 256], strides = [1, 1]} : vector<16x256xf32> to vector<1x256xf32>
    %167 = vector.broadcast %165 : vector<4x1xf32> to vector<4x256xf32>
    %168 = vector.broadcast %166 : vector<1x256xf32> to vector<4x256xf32>
    %169 = arith.mulf %167, %168 : vector<4x256xf32>
    %170 = arith.addf %164, %169 : vector<4x256xf32>
    %171 = vector.extract_strided_slice %120 {offsets = [0, 0], sizes = [4, 1], strides = [1, 1]} : vector<4x8xf32> to vector<4x1xf32>
    %172 = vector.extract_strided_slice %119 {offsets = [4, 0], sizes = [1, 256], strides = [1, 1]} : vector<16x256xf32> to vector<1x256xf32>
    %173 = vector.broadcast %171 : vector<4x1xf32> to vector<4x256xf32>
    %174 = vector.broadcast %172 : vector<1x256xf32> to vector<4x256xf32>
    %175 = arith.mulf %173, %174 : vector<4x256xf32>
    %176 = vector.broadcast %121 : vector<4x1xf32> to vector<4x256xf32>
    %177 = arith.addf %176, %175 : vector<4x256xf32>
    %178 = vector.extract_strided_slice %120 {offsets = [0, 1], sizes = [4, 1], strides = [1, 1]} : vector<4x8xf32> to vector<4x1xf32>
    %179 = vector.extract_strided_slice %119 {offsets = [5, 0], sizes = [1, 256], strides = [1, 1]} : vector<16x256xf32> to vector<1x256xf32>
    %180 = vector.broadcast %178 : vector<4x1xf32> to vector<4x256xf32>
    %181 = vector.broadcast %179 : vector<1x256xf32> to vector<4x256xf32>
    %182 = arith.mulf %180, %181 : vector<4x256xf32>
    %183 = arith.addf %177, %182 : vector<4x256xf32>
    %184 = vector.extract_strided_slice %120 {offsets = [0, 2], sizes = [4, 1], strides = [1, 1]} : vector<4x8xf32> to vector<4x1xf32>
    %185 = vector.extract_strided_slice %119 {offsets = [6, 0], sizes = [1, 256], strides = [1, 1]} : vector<16x256xf32> to vector<1x256xf32>
    %186 = vector.broadcast %184 : vector<4x1xf32> to vector<4x256xf32>
    %187 = vector.broadcast %185 : vector<1x256xf32> to vector<4x256xf32>
    %188 = arith.mulf %186, %187 : vector<4x256xf32>
    %189 = arith.addf %183, %188 : vector<4x256xf32>
    %190 = vector.extract_strided_slice %120 {offsets = [0, 3], sizes = [4, 1], strides = [1, 1]} : vector<4x8xf32> to vector<4x1xf32>
    %191 = vector.extract_strided_slice %119 {offsets = [7, 0], sizes = [1, 256], strides = [1, 1]} : vector<16x256xf32> to vector<1x256xf32>
    %192 = vector.broadcast %190 : vector<4x1xf32> to vector<4x256xf32>
    %193 = vector.broadcast %191 : vector<1x256xf32> to vector<4x256xf32>
    %194 = arith.mulf %192, %193 : vector<4x256xf32>
    %195 = arith.addf %189, %194 : vector<4x256xf32>
    %196 = vector.extract_strided_slice %120 {offsets = [0, 4], sizes = [4, 1], strides = [1, 1]} : vector<4x8xf32> to vector<4x1xf32>
    %197 = vector.extract_strided_slice %119 {offsets = [12, 0], sizes = [1, 256], strides = [1, 1]} : vector<16x256xf32> to vector<1x256xf32>
    %198 = vector.broadcast %196 : vector<4x1xf32> to vector<4x256xf32>
    %199 = vector.broadcast %197 : vector<1x256xf32> to vector<4x256xf32>
    %200 = arith.mulf %198, %199 : vector<4x256xf32>
    %201 = arith.addf %195, %200 : vector<4x256xf32>
    %202 = vector.extract_strided_slice %120 {offsets = [0, 5], sizes = [4, 1], strides = [1, 1]} : vector<4x8xf32> to vector<4x1xf32>
    %203 = vector.extract_strided_slice %119 {offsets = [13, 0], sizes = [1, 256], strides = [1, 1]} : vector<16x256xf32> to vector<1x256xf32>
    %204 = vector.broadcast %202 : vector<4x1xf32> to vector<4x256xf32>
    %205 = vector.broadcast %203 : vector<1x256xf32> to vector<4x256xf32>
    %206 = arith.mulf %204, %205 : vector<4x256xf32>
    %207 = arith.addf %201, %206 : vector<4x256xf32>
    %208 = vector.extract_strided_slice %120 {offsets = [0, 6], sizes = [4, 1], strides = [1, 1]} : vector<4x8xf32> to vector<4x1xf32>
    %209 = vector.extract_strided_slice %119 {offsets = [14, 0], sizes = [1, 256], strides = [1, 1]} : vector<16x256xf32> to vector<1x256xf32>
    %210 = vector.broadcast %208 : vector<4x1xf32> to vector<4x256xf32>
    %211 = vector.broadcast %209 : vector<1x256xf32> to vector<4x256xf32>
    %212 = arith.mulf %210, %211 : vector<4x256xf32>
    %213 = arith.addf %207, %212 : vector<4x256xf32>
    %214 = vector.extract_strided_slice %120 {offsets = [0, 7], sizes = [4, 1], strides = [1, 1]} : vector<4x8xf32> to vector<4x1xf32>
    %215 = vector.extract_strided_slice %119 {offsets = [15, 0], sizes = [1, 256], strides = [1, 1]} : vector<16x256xf32> to vector<1x256xf32>
    %216 = vector.broadcast %214 : vector<4x1xf32> to vector<4x256xf32>
    %217 = vector.broadcast %215 : vector<1x256xf32> to vector<4x256xf32>
    %218 = arith.mulf %216, %217 : vector<4x256xf32>
    %219 = arith.addf %213, %218 : vector<4x256xf32>
    %220 = tpu.concatenate %170, %219 in 0 : vector<4x256xf32>, vector<4x256xf32> -> vector<8x256xf32>
    %221 = arith.negf %220 : vector<8x256xf32>
    %222 = math.exp %221 : vector<8x256xf32>
    %cst = arith.constant 1.000000e+00 : f32
    %223 = vector.broadcast %cst : f32 to vector<8x256xf32>
    %224 = arith.addf %223, %222 : vector<8x256xf32>
    %225 = arith.divf %223, %224 : vector<8x256xf32>
    %226 = arith.mulf %0, %225 : vector<8x256xf32>
    %c0_66 = arith.constant 0 : index
    %c0_67 = arith.constant 0 : index
    %227 = vector.load %arg7[%c0_66, %c0_67] : memref<8x256xf32, #tpu.memory_space<vmem>>, vector<8x256xf32>
    tpu.vector_store %arg7[%c0_66, %c0_67], %226 {strides = array<i32>} : memref<8x256xf32, #tpu.memory_space<vmem>>, vector<8x256xf32>,
    return
  }
  func.func @transform_0(%arg0: i32) -> (i32, i32) {
    %c0_i32 = arith.constant 0 : i32
    %c0_i32_0 = arith.constant 0 : i32
    return %arg0, %c0_i32 : i32, i32
  }
  func.func @transform_1(%arg0: i32) -> (i32, i32) {
    %c0_i32 = arith.constant 0 : i32
    %c0_i32_0 = arith.constant 0 : i32
    %c0_i32_1 = arith.constant 0 : i32
    return %c0_i32, %c0_i32_0 : i32, i32
  }
  func.func @transform_2(%arg0: i32) -> (i32, i32) {
    %c0_i32 = arith.constant 0 : i32
    %c0_i32_0 = arith.constant 0 : i32
    %c0_i32_1 = arith.constant 0 : i32
    return %c0_i32, %c0_i32_0 : i32, i32
  }
  func.func @transform_3(%arg0: i32) -> (i32, i32, i32) {
    %c0_i32 = arith.constant 0 : i32
    %c0_i32_0 = arith.constant 0 : i32
    %c0_i32_1 = arith.constant 0 : i32
    %c0_i32_2 = arith.constant 0 : i32
    return %c0_i32, %c0_i32_0, %c0_i32_1 : i32, i32, i32
  }
  func.func @transform_4(%arg0: i32) -> (i32, i32) {
    %c0_i32 = arith.constant 0 : i32
    %c0_i32_0 = arith.constant 0 : i32
    %c0_i32_1 = arith.constant 0 : i32
    return %c0_i32, %c0_i32_0 : i32, i32
  }
  func.func @transform_5(%arg0: i32) -> (i32, i32) {
    %c0_i32 = arith.constant 0 : i32
    %c0_i32_0 = arith.constant 0 : i32
    %c0_i32_1 = arith.constant 0 : i32
    return %c0_i32, %c0_i32_0 : i32, i32
  }
  func.func @transform_6(%arg0: i32) -> (i32, i32) {
    %c0_i32 = arith.constant 0 : i32
    %c0_i32_0 = arith.constant 0 : i32
    return %arg0, %c0_i32 : i32, i32
  }
}

</mosaic_0001>

<bundles_post_ra>
// kernel: spatial_attention.1
= control target key start
LH: loop header
LB: loop body
LE: loop exit
PB: predicated region body
PF: predicated region fallthrough
CT: control target
= control target key end

     0   :  { %v920_v1 = vmov 0   ;;  %s921_s23 = smov 16   ;;  %s922_s24 = smov 17   ;;  %v924_v3 = vmov 1   ;;  %v930_v6 = vmov 2   ;;  %v931_v7 = vmov 3   ;;  %s1610_s0 = inlined_call_operand.vmem [shape: f32[8,256], index: 0, kind: input, shape index: {}]   ;;  %s1611_s4 = inlined_call_operand.vmem [shape: f32[4,8], index: 4, kind: input, shape index: {}]   ;;  %s1612_s5 = inlined_call_operand.vmem [shape: f32[4,1], index: 5, kind: input, shape index: {}]   ;;  %s1613_s1 = inlined_call_operand.vmem [shape: f32[9,256], index: 1, kind: input, shape index: {}]   ;;  %s1614_s2 = inlined_call_operand.vmem [shape: f32[9,256], index: 2, kind: input, shape index: {}]   ;;  %s1615_s3 = inlined_call_operand.vmem [shape: f32[9,16,256], index: 3, kind: input, shape index: {}]   ;;  %s1616_s6 = inlined_call_operand.vmem [shape: f32[8,256], index: 6, kind: output, shape index: {}]  }
   0x1   :  { %v974_v0 = vld [vmem:[%s1610_s0] sm:$0xff]  ;;  %902 = vset.pattern.permute.xlu0 %v920_v1  ;;  %v983_v2 = vld [vmem:[%s1610_s0 + $0x8] sm:$0xff]  ;;  %s923_s27 = smov 15   ;;  %903 = vset.pattern.permute.xlu1 %v924_v3  ;;  %s925_s28 = smov 1   ;;  %v932_v8 = vmov 5   ;;  %v933_v9 = vmov 4   ;;  %v28_v10 = vlaneseq }
   0x2   :  { %81 = vrot.lane.b32.xlu1 %v974_v0, %s921_s23  ;;  %40 = vrot.lane.b32.xlu0 %v974_v0, %s922_s24  ;;  %s926_s29 = smov 127   ;;  %s927_s30 = smov 113   ;;  %v1016_v4 = vld [vmem:[%s1611_s4] sm:$0xf]  ;;  %vm814_vm8 = vcmask 1043456  }
   0x3   :  { %s928_s7 = smov 112   ;;  %s929_s8 = smov 111   ;;  %v577_v5 = vld [vmem:[%s1612_s5] sm:$0xf]  ;;  %v1025_v11 = vshrl.u32 %v28_v10, 7  ;;  %v1027_v14 = vand.u32 127, %v28_v10 }
   0x4   :  { %v837_v18 = vld [vmem:[%s1613_s1 + $0x4] ss:$8 sm:$0x3]  ;;  %v49_v19 = vld [vmem:[%s1613_s1] ss:$8 sm:$0x3] }
   0x5   :  { %v1030_v15 = vsub.s32 0, %v1025_v11  ;;  %v1033_v16 = vsub.s32 1, %v1025_v11  ;;  %vm46_vm0 = vcmp.lt.s32.totalorder %v1027_v14, 17  ;;  %vm85_vm1 = vcmp.lt.s32.totalorder %v1027_v14, 16 }
   0x6   :  { %83 = vrot.lane.b32.xlu1 %v983_v2, %s921_s23  ;;  %42 = vrot.lane.b32.xlu0 %v983_v2, %s922_s24  ;;  %v838_v29 = vld [vmem:[%s1613_s1 + $0x1] ss:$8 sm:$0x3]  ;;  %v1062_v31 = vld [vmem:[%s1614_s2] ss:$8 sm:$0x3] }
   0x7   :  { %v31_v21 = vrot.slane %v837_v18, %v1030_v15  ;;  %v35_v22 = vrot.slane %v837_v18, %v1033_v16  ;;  %v54_v23 = vrot.slane %v49_v19, %v1030_v15  ;;  %v58_v24 = vrot.slane %v49_v19, %v1033_v16  ;;  %v840_v35 = vld [vmem:[%s1613_s1 + $0x2] ss:$8 sm:$0x3]  ;;  %v842_v40 = vld [vmem:[%s1613_s1 + $0x3] ss:$8 sm:$0x3] }
   0x8   :  { %v94_v38 = vrot.slane %v838_v29, %v1030_v15  ;;  %v98_v39 = vrot.slane %v838_v29, %v1033_v16  ;;  %vm126_vm2 = vcmp.lt.s32.totalorder %v1027_v14, 15  ;;  %v70_v43 = vrot.slane %v1062_v31, %v1030_v15  ;;  %v844_v44 = vld [vmem:[%s1613_s1 + $0x5] ss:$8 sm:$0x3] }
   0x9   :  { %v39_v30 = vmul.f32 %v35_v22, %v983_v2  ;;  %v38_v32 = vmul.f32 %v31_v21, %v974_v0  ;;  %vm167_vm3 = vcmp.lt.s32.totalorder %v1027_v14, 1  ;;  %v135_v47 = vrot.slane %v840_v35, %v1030_v15  ;;  %v846_v58 = vld [vmem:[%s1613_s1 + $0x6] ss:$8 sm:$0x3] }
   0xa   :  { %124 = vrot.lane.b32.xlu1 %v983_v2, %s923_s27  ;;  %122 = vrot.lane.b32.xlu0 %v974_v0, %s923_s27  ;;  %v139_v48 = vrot.slane %v840_v35, %v1033_v16  ;;  %v176_v51 = vrot.slane %v842_v40, %v1030_v15  ;;  %v180_v52 = vrot.slane %v842_v40, %v1033_v16  ;;  %vm208_vm4 = vcmp.lt.s32.totalorder %v1027_v14, 127  ;;  %v850_v19 = vld [vmem:[%s1613_s1 + $0x10] ss:$8 sm:$0x3] }
   0xb   :  { %v217_v57 = vrot.slane %v844_v44, %v1030_v15  ;;  %v221_v61 = vrot.slane %v844_v44, %v1033_v16  ;;  %vm249_vm5 = vcmp.lt.s32.totalorder %v1027_v14, 113  ;;  %v258_v10 = vrot.slane %v846_v58, %v1030_v15  ;;  %v841_v44 = vld [vmem:[%s1614_s2 + $0x2] ss:$8 sm:$0x3] }
   0xc   :  { %v262_v18 = vrot.slane %v846_v58, %v1033_v16  ;;  %vm290_vm6 = vcmp.lt.s32.totalorder %v1027_v14, 112  ;;  %vm331_vm7 = vcmp.lt.s32.totalorder %v1027_v14, 111 }
   0xe   :  { %165 = vrot.lane.b32.xlu1 %v983_v2, %s925_s28  ;;  %163 = vrot.lane.b32.xlu0 %v974_v0, %s925_s28 }
  0x12   :  { %206 = vrot.lane.b32.xlu1 %v983_v2, %s926_s29  ;;  %204 = vrot.lane.b32.xlu0 %v974_v0, %s926_s29 }
  0x16   :  { %247 = vrot.lane.b32.xlu1 %v983_v2, %s927_s30  ;;  %245 = vrot.lane.b32.xlu0 %v974_v0, %s927_s30 }
  0x1a   :  { %288 = vrot.lane.b32.xlu1 %v983_v2, %s928_s7  ;;  %286 = vrot.lane.b32.xlu0 %v974_v0, %s928_s7 }
  0x1e   :  { %329 = vrot.lane.b32.xlu1 %v983_v2, %s929_s8  ;;  %327 = vrot.lane.b32.xlu0 %v974_v0, %s929_s8 }
  0x22   :  { %580 = vperm.xlu0 %902, %v1016_v4   ;;  %601 = vperm.xlu1 %903, %v1016_v4  }
  0x26   :  { %595 = vperm.xlu0 %902, %v577_v5   ;;  %907 = vset.pattern.permute.xlu1 %v932_v8  ;;  %v848_v5 = vld [vmem:[%s1613_s1 + $0x7] ss:$8 sm:$0x3] }
  0x27   :  { %v299_v22 = vrot.slane %v848_v5, %v1030_v15 }
  0x2a   :  { %904 = vset.pattern.permute.xlu0 %v930_v6  ;;  %v74_v6 = vrot.slane %v1062_v31, %v1033_v16 }
  0x2b   :  { %617 = vperm.xlu0 %904, %v1016_v4  }
  0x2f   :  { %905 = vset.pattern.permute.xlu0 %v931_v7 }
  0x30   :  { %633 = vperm.xlu0 %905, %v1016_v4  }
  0x34   :  { %906 = vset.pattern.permute.xlu0 %v933_v9 }
  0x74   :  { %v82_v12 = vpop.permute.xlu1 %81  ;;  %v41_v13 = vpop.permute.xlu0 %40 }
  0x78   :  { %v84_v17 = vpop.permute.xlu1 %83  ;;  %v43_v20 = vpop.permute.xlu0 %42 }
  0x79   :  { %v1048_v25 = vsel %vm46_vm0, %v41_v13, %v43_v20  ;;  %v1052_v26 = vsel %vm46_vm0, %v43_v20, %v41_v13  ;;  %v1078_v41 = vsel %vm85_vm1, %v82_v12, %v84_v17  ;;  %v1082_v42 = vsel %vm85_vm1, %v84_v17, %v82_v12 }
  0x7a   :  { %v61_v33 = vmul.f32 %v54_v23, %v1052_v26  ;;  %v62_v34 = vmul.f32 %v58_v24, %v1048_v25  ;;  %v101_v55 = vmul.f32 %v94_v38, %v1082_v42  ;;  %v102_v56 = vmul.f32 %v98_v39, %v1078_v41 }
  0x7b   :  { %v303_v23 = vrot.slane %v848_v5, %v1033_v16  ;;  %v77_v39 = vadd.f32 %v70_v43, %v1052_v26  ;;  %v78_v40 = vadd.f32 %v74_v6, %v1048_v25 }
  0x7c   :  { %v125_v27 = vpop.permute.xlu1 %124  ;;  %v123_v28 = vpop.permute.xlu0 %122  ;;  %v63_v45 = vadd.f32 %v61_v33, %v38_v32  ;;  %v64_v46 = vadd.f32 %v62_v34, %v39_v30  ;;  %v340_v32 = vrot.slane %v850_v19, %v1030_v15  ;;  %v344_v33 = vrot.slane %v850_v19, %v1033_v16  ;;  %v839_v34 = vld [vmem:[%s1614_s2 + $0x1] ss:$8 sm:$0x3] }
  0x7d   :  { %v1094_v49 = vsel %vm126_vm2, %v123_v28, %v125_v27  ;;  %v1098_v50 = vsel %vm126_vm2, %v125_v27, %v123_v28  ;;  %v115_v26 = vrot.slane %v839_v34, %v1033_v16 }
  0x7e   :  { %v104_v62 = vadd.f32 %v102_v56, %v64_v46  ;;  %v103_v63 = vadd.f32 %v101_v55, %v63_v45  ;;  %v142_v1 = vmul.f32 %v135_v47, %v1098_v50  ;;  %v143_v3 = vmul.f32 %v139_v48, %v1094_v49  ;;  %v843_v56 = vld [vmem:[%s1614_s2 + $0x3] ss:$8 sm:$0x3] }
  0x7f   :  { %v156_v55 = vrot.slane %v841_v44, %v1033_v16 }
  0x80   :  { %v166_v36 = vpop.permute.xlu1 %165  ;;  %v164_v37 = vpop.permute.xlu0 %163  ;;  %v144_v24 = vadd.f32 %v142_v1, %v103_v63  ;;  %v145_v27 = vadd.f32 %v143_v3, %v104_v62  ;;  %v80_v62 = vmax.f32 %v983_v2, %v78_v40  ;;  %v845_v3 = vld [vmem:[%s1614_s2 + $0x5] ss:$8 sm:$0x3]  ;;  %v119_v2 = vadd.f32 %v115_v26, %v1078_v41 }
  0x81   :  { %v1111_v59 = vsel %vm167_vm3, %v164_v37, %v166_v36  ;;  %v1115_v60 = vsel %vm167_vm3, %v166_v36, %v164_v37  ;;  %v238_v41 = vrot.slane %v845_v3, %v1033_v16 }
  0x82   :  { %v183_v13 = vmul.f32 %v176_v51, %v1115_v60  ;;  %v184_v17 = vmul.f32 %v180_v52, %v1111_v59 }
  0x84   :  { %v207_v53 = vpop.permute.xlu1 %206  ;;  %v205_v54 = vpop.permute.xlu0 %204  ;;  %v185_v35 = vadd.f32 %v183_v13, %v144_v24  ;;  %v186_v36 = vadd.f32 %v184_v17, %v145_v27  ;;  %v197_v13 = vrot.slane %v843_v56, %v1033_v16  ;;  %v847_v24 = vld [vmem:[%s1614_s2 + $0x6] ss:$8 sm:$0x3]  ;;  %v160_v27 = vadd.f32 %v156_v55, %v1094_v49 }
  0x85   :  { %v1128_v7 = vsel %vm208_vm4, %v205_v54, %v207_v53  ;;  %v1132_v8 = vsel %vm208_vm4, %v207_v53, %v205_v54  ;;  %v111_v53 = vrot.slane %v839_v34, %v1030_v15  ;;  %v152_v54 = vrot.slane %v841_v44, %v1030_v15 }
  0x86   :  { %v224_v28 = vmul.f32 %v217_v57, %v1128_v7  ;;  %v225_v29 = vmul.f32 %v221_v61, %v1132_v8  ;;  %v79_v61 = vmax.f32 %v974_v0, %v77_v39  ;;  %v193_v0 = vrot.slane %v843_v56, %v1030_v15 }
  0x87   :  { %v279_v49 = vrot.slane %v847_v24, %v1033_v16 }
  0x88   :  { %v248_v9 = vpop.permute.xlu1 %247  ;;  %v246_v12 = vpop.permute.xlu0 %245  ;;  %v226_v47 = vadd.f32 %v224_v28, %v185_v35  ;;  %v227_v48 = vadd.f32 %v225_v29, %v186_v36  ;;  %v849_v28 = vld [vmem:[%s1614_s2 + $0x7] ss:$8 sm:$0x3]  ;;  %v201_v29 = vadd.f32 %v197_v13, %v1111_v59  ;;  %v242_v36 = vadd.f32 %v238_v41, %v1132_v8 }
  0x89   :  { %v1144_v20 = vsel %vm249_vm5, %v246_v12, %v248_v9  ;;  %v1148_v21 = vsel %vm249_vm5, %v248_v9, %v246_v12  ;;  %v118_v12 = vadd.f32 %v111_v53, %v1082_v42  ;;  %v121_v42 = vmax.f32 %v80_v62, %v119_v2 }
  0x8a   :  { %v265_v37 = vmul.f32 %v258_v10, %v1144_v20  ;;  %v266_v38 = vmul.f32 %v262_v18, %v1148_v21  ;;  %v316_v34 = vrot.slane %v849_v28, %v1030_v15 }
  0x8b   :  { %v120_v19 = vmax.f32 %v79_v61, %v118_v12  ;;  %v162_v35 = vmax.f32 %v121_v42, %v160_v27  ;;  %v853_v42 = vld [vmem:[%s1615_s3 + $0x88] sm:$0xff] }
  0x8c   :  { %v289_v30 = vpop.permute.xlu1 %288  ;;  %v287_v31 = vpop.permute.xlu0 %286  ;;  %v267_v57 = vadd.f32 %v265_v37, %v226_v47  ;;  %v268_v58 = vadd.f32 %v266_v38, %v227_v48  ;;  %v857_v27 = vld [vmem:[%s1615_s3 + $0x28] sm:$0xff] }
  0x8d   :  { %v291_v45 = vsel %vm290_vm6, %v287_v31, %v289_v30  ;;  %v292_v46 = vsel %vm290_vm6, %v289_v30, %v287_v31  ;;  %v275_v30 = vrot.slane %v847_v24, %v1030_v15  ;;  %v851_v31 = vld [vmem:[%s1614_s2 + $0x10] ss:$8 sm:$0x3]  ;;  %v203_v38 = vmax.f32 %v162_v35, %v201_v29 }
  0x8e   :  { %v306_v51 = vmul.f32 %v299_v22, %v291_v45  ;;  %v307_v52 = vmul.f32 %v303_v23, %v292_v46  ;;  %v159_v22 = vadd.f32 %v152_v54, %v1098_v50  ;;  %v234_v23 = vrot.slane %v845_v3, %v1030_v15 }
  0x8f   :  { %v200_v50 = vadd.f32 %v193_v0, %v1115_v60  ;;  %v320_v60 = vrot.slane %v849_v28, %v1033_v16  ;;  %v357_v37 = vrot.slane %v851_v31, %v1030_v15  ;;  %v282_v39 = vadd.f32 %v275_v30, %v1144_v20  ;;  %v389_v28 = vld [vmem:[%s1615_s3] sm:$0xff]  ;;  %v861_v30 = vld [vmem:[%s1615_s3 + $0x48] sm:$0xff] }
  0x90   :  { %v330_v43 = vpop.permute.xlu1 %329  ;;  %v328_v25 = vpop.permute.xlu0 %327  ;;  %v308_v5 = vadd.f32 %v306_v51, %v267_v57  ;;  %v309_v6 = vadd.f32 %v307_v52, %v268_v58  ;;  %v361_v40 = vrot.slane %v851_v31, %v1033_v16  ;;  %v244_v8 = vmax.f32 %v203_v38, %v242_v36  ;;  %v852_v31 = vld [vmem:[%s1615_s3 + $0x80] sm:$0xff] }
  0x91   :  { %v332_v63 = vsel %vm331_vm7, %v328_v25, %v330_v43  ;;  %v333_v1 = vsel %vm331_vm7, %v330_v43, %v328_v25  ;;  %v323_v47 = vadd.f32 %v316_v34, %v291_v45  ;;  %v324_v48 = vadd.f32 %v320_v60, %v292_v46 }
  0x92   :  { %v347_v9 = vmul.f32 %v340_v32, %v332_v63  ;;  %v348_v10 = vmul.f32 %v344_v33, %v333_v1  ;;  %v161_v32 = vmax.f32 %v120_v19, %v159_v22  ;;  %v241_v33 = vadd.f32 %v234_v23, %v1128_v7  ;;  %v390_v19 = vld [vmem:[%s1615_s3 + $0x8] sm:$0xff] }
  0x93   :  { %v283_v7 = vadd.f32 %v279_v49, %v1148_v21  ;;  %v364_v53 = vadd.f32 %v357_v37, %v332_v63  ;;  %v365_v26 = vadd.f32 %v361_v40, %v333_v1  ;;  %v934_v46 = vmov 7   ;;  %v865_v37 = vld [vmem:[%s1615_s3 + $0x68] sm:$0xff] }
  0x94   :  { %v1191_v17 = vadd.f32 %v347_v9, %v308_v5  ;;  %v1193_v18 = vadd.f32 %v348_v10, %v309_v6  ;;  %v202_v59 = vmax.f32 %v161_v32, %v200_v50  ;;  %v935_v25 = vmov 6  }
  0x95   :  { %v285_v52 = vmax.f32 %v244_v8, %v283_v7 }
  0x96   :  { %381 = vrot.lane.b32.xlu1 %v1193_v18, %s922_s24  ;;  %377 = vrot.lane.b32.xlu0 %v1191_v17, %s922_s24  ;;  %v243_v44 = vmax.f32 %v202_v59, %v241_v33  ;;  %v374_v32 = vmul.f32 %v853_v42, %v1193_v18  ;;  %v856_v33 = vld [vmem:[%s1615_s3 + $0x20] sm:$0xff] }
  0x97   :  { %v326_v20 = vmax.f32 %v285_v52, %v324_v48  ;;  %v864_v52 = vld [vmem:[%s1615_s3 + $0x60] sm:$0xff] }
  0x98   :  { %v284_v51 = vmax.f32 %v243_v44, %v282_v39  ;;  %v860_v39 = vld [vmem:[%s1615_s3 + $0x40] sm:$0xff]  ;;  %v373_v44 = vmul.f32 %v852_v31, %v1191_v17 }
  0x99   :  { %v1238_v45 = vmax.f32 %v326_v20, %v365_v26  ;;  %v872_v42 = vld [vmem:[%s1615_s3 + $0xc0] sm:$0xff] }
  0x9a   :  { %405 = vrot.lane.b32.xlu1 %v1193_v18, %s921_s23  ;;  %401 = vrot.lane.b32.xlu0 %v1191_v17, %s921_s23  ;;  %v325_v43 = vmax.f32 %v284_v51, %v323_v47  ;;  %v869_v47 = vld [vmem:[%s1615_s3 + $0xa8] sm:$0xff] }
  0x9c   :  { %v1236_v21 = vmax.f32 %v325_v43, %v364_v53 }
  0x9e   :  { %430 = vrot.lane.b32.xlu1 %v1193_v18, %s923_s27  ;;  %426 = vrot.lane.b32.xlu0 %v1191_v17, %s923_s27 }
  0xa1   :  { %v1292_v54 = vpop.permute.xlu0 %580  ;;  %v1298_v57 = vpop.permute.xlu1 %601 }
  0xa2   :  { %455 = vrot.lane.b32.xlu1 %v1193_v18, %s925_s28  ;;  %451 = vrot.lane.b32.xlu0 %v1191_v17, %s925_s28 }
  0xa5   :  { %v1294_v55 = vpop.permute.xlu0 %595 }
  0xa6   :  { %383 = vrot.lane.b32.xlu1 %v1238_v45, %s922_s24  ;;  %379 = vrot.lane.b32.xlu0 %v1236_v21, %s922_s24 }
  0xaa   :  { %480 = vrot.lane.b32.xlu1 %v1193_v18, %s926_s29  ;;  %476 = vrot.lane.b32.xlu0 %v1191_v17, %s926_s29  ;;  %v1296_v56 = vpop.permute.xlu0 %617 }
  0xae   :  { %407 = vrot.lane.b32.xlu1 %v1238_v45, %s921_s23  ;;  %403 = vrot.lane.b32.xlu0 %v1236_v21, %s921_s23 }
  0xaf   :  { %v1300_v58 = vpop.permute.xlu0 %633 }
  0xb2   :  { %505 = vrot.lane.b32.xlu1 %v1193_v18, %s927_s30  ;;  %501 = vrot.lane.b32.xlu0 %v1191_v17, %s927_s30 }
  0xb6   :  { %432 = vrot.lane.b32.xlu1 %v1238_v45, %s923_s27  ;;  %428 = vrot.lane.b32.xlu0 %v1236_v21, %s923_s27 }
  0xba   :  { %530 = vrot.lane.b32.xlu1 %v1193_v18, %s928_s7  ;;  %526 = vrot.lane.b32.xlu0 %v1191_v17, %s928_s7 }
  0xbe   :  { %457 = vrot.lane.b32.xlu1 %v1238_v45, %s925_s28  ;;  %453 = vrot.lane.b32.xlu0 %v1236_v21, %s925_s28 }
  0xc2   :  { %555 = vrot.lane.b32.xlu1 %v1193_v18, %s929_s8  ;;  %551 = vrot.lane.b32.xlu0 %v1191_v17, %s929_s8 }
  0xc6   :  { %478 = vrot.lane.b32.xlu1 %v1236_v21, %s926_s29  ;;  %503 = vrot.lane.b32.xlu0 %v1236_v21, %s927_s30 }
  0xca   :  { %482 = vrot.lane.b32.xlu1 %v1238_v45, %s926_s29  ;;  %649 = vperm.xlu0 %906, %v1016_v4  }
  0xce   :  { %665 = vperm.xlu1 %907, %v1016_v4   ;;  %909 = vset.pattern.permute.xlu0 %v934_v46 }
  0xcf   :  { %697 = vperm.xlu0 %909, %v1016_v4  }
  0xd2   :  { %507 = vrot.lane.b32.xlu1 %v1238_v45, %s927_s30 }
  0xd3   :  { %908 = vset.pattern.permute.xlu1 %v935_v25  ;;  %v873_v25 = vld [vmem:[%s1615_s3 + $0xc8] sm:$0xff] }
  0xd6   :  { %528 = vrot.lane.b32.xlu1 %v1236_v21, %s928_s7 }
  0xda   :  { %532 = vrot.lane.b32.xlu1 %v1238_v45, %s928_s7 }
  0xde   :  { %553 = vrot.lane.b32.xlu1 %v1236_v21, %s929_s8 }
  0xe2   :  { %557 = vrot.lane.b32.xlu1 %v1238_v45, %s929_s8 }
  0xe6   :  { %681 = vperm.xlu1 %908, %v1016_v4  }
 0x108   :  { %v382_v61 = vpop.permute.xlu1 %381  ;;  %v378_v62 = vpop.permute.xlu0 %377 }
 0x109   :  { %v385_v22 = vsel %vm46_vm0, %v378_v62, %v382_v61  ;;  %v387_v50 = vsel %vm46_vm0, %v382_v61, %v378_v62 }
 0x10a   :  { %v394_v29 = vmul.f32 %v390_v19, %v385_v22  ;;  %v393_v59 = vmul.f32 %v389_v28, %v387_v50 }
 0x10c   :  { %v406_v63 = vpop.permute.xlu1 %405  ;;  %v402_v1 = vpop.permute.xlu0 %401  ;;  %v398_v38 = vadd.f32 %v394_v29, %v374_v32  ;;  %v397_v17 = vadd.f32 %v393_v59, %v373_v44 }
 0x10d   :  { %v409_v41 = vsel %vm85_vm1, %v402_v1, %v406_v63  ;;  %v411_v34 = vsel %vm85_vm1, %v406_v63, %v402_v1  ;;  %v868_v63 = vld [vmem:[%s1615_s3 + $0xa0] sm:$0xff] }
 0x10e   :  { %v419_v35 = vmul.f32 %v857_v27, %v409_v41  ;;  %v418_v8 = vmul.f32 %v856_v33, %v411_v34 }
 0x110   :  { %v431_v3 = vpop.permute.xlu1 %430  ;;  %v427_v5 = vpop.permute.xlu0 %426  ;;  %v423_v51 = vadd.f32 %v419_v35, %v398_v38  ;;  %v880_v35 = vld [vmem:[%s1615_s3 + $0x100] sm:$0xff] }
 0x111   :  { %v434_v49 = vsel %vm126_vm2, %v427_v5, %v431_v3  ;;  %v436_v7 = vsel %vm126_vm2, %v431_v3, %v427_v5  ;;  %v422_v5 = vadd.f32 %v418_v8, %v397_v17  ;;  %v1410_v8 = vsub.s32 3, %v1025_v11 }
 0x112   :  { %v444_v40 = vmul.f32 %v861_v30, %v434_v49  ;;  %v443_v46 = vmul.f32 %v860_v39, %v436_v7  ;;  %v876_v30 = vld [vmem:[%s1615_s3 + $0xe0] sm:$0xff] }
 0x114   :  { %v456_v6 = vpop.permute.xlu1 %455  ;;  %v452_v9 = vpop.permute.xlu0 %451  ;;  %v448_v62 = vadd.f32 %v444_v40, %v423_v51  ;;  %v447_v28 = vadd.f32 %v443_v46, %v422_v5 }
 0x115   :  { %v459_v18 = vsel %vm167_vm3, %v452_v9, %v456_v6  ;;  %v461_v53 = vsel %vm167_vm3, %v456_v6, %v452_v9  ;;  %v877_v9 = vld [vmem:[%s1615_s3 + $0xe8] sm:$0xff] }
 0x116   :  { %v469_v26 = vmul.f32 %v865_v37, %v459_v18  ;;  %v468_v6 = vmul.f32 %v864_v52, %v461_v53  ;;  %v1403_v37 = vsub.s32 2, %v1025_v11  ;;  %v1416_v52 = vsub.s32 5, %v1025_v11 }
 0x117   :  { %v1419_v53 = vsub.s32 6, %v1025_v11 }
 0x118   :  { %v1302_v10 = vpop.permute.xlu1 %383  ;;  %v1304_v4 = vpop.permute.xlu0 %379  ;;  %v473_v22 = vadd.f32 %v469_v26, %v448_v62  ;;  %v472_v32 = vadd.f32 %v468_v6, %v447_v28 }
 0x11c   :  { %v481_v12 = vpop.permute.xlu1 %480  ;;  %v477_v0 = vpop.permute.xlu0 %476 }
 0x11d   :  { %v486_v48 = vsel %vm208_vm4, %v481_v12, %v477_v0  ;;  %v484_v1 = vsel %vm208_vm4, %v477_v0, %v481_v12 }
 0x11e   :  { %v494_v3 = vmul.f32 %v869_v47, %v486_v48  ;;  %v493_v50 = vmul.f32 %v868_v63, %v484_v1  ;;  %v1413_v47 = vsub.s32 4, %v1025_v11 }
 0x120   :  { %v1306_v2 = vpop.permute.xlu1 %407  ;;  %v1308_v13 = vpop.permute.xlu0 %403  ;;  %v498_v29 = vadd.f32 %v494_v3, %v473_v22  ;;  %v497_v18 = vadd.f32 %v493_v50, %v472_v32 }
 0x124   :  { %v506_v23 = vpop.permute.xlu1 %505  ;;  %v502_v24 = vpop.permute.xlu0 %501 }
 0x125   :  { %v511_v61 = vsel %vm249_vm5, %v506_v23, %v502_v24  ;;  %v509_v27 = vsel %vm249_vm5, %v502_v24, %v506_v23  ;;  %v881_v23 = vld [vmem:[%s1615_s3 + $0x108] sm:$0xff] }
 0x126   :  { %v519_v41 = vmul.f32 %v873_v25, %v511_v61  ;;  %v518_v33 = vmul.f32 %v872_v42, %v509_v27 }
 0x128   :  { %v1342_v36 = vpop.permute.xlu1 %432  ;;  %v1344_v60 = vpop.permute.xlu0 %428  ;;  %v523_v24 = vadd.f32 %v519_v41, %v498_v29  ;;  %v522_v48 = vadd.f32 %v518_v33, %v497_v18 }
 0x12c   :  { %v531_v43 = vpop.permute.xlu1 %530  ;;  %v527_v20 = vpop.permute.xlu0 %526 }
 0x12d   :  { %v536_v19 = vsel %vm290_vm6, %v531_v43, %v527_v20  ;;  %v534_v49 = vsel %vm290_vm6, %v527_v20, %v531_v43  ;;  %v1422_v20 = vsub.s32 7, %v1025_v11 }
 0x12e   :  { %v544_v31 = vmul.f32 %v877_v9, %v536_v19  ;;  %v543_v38 = vmul.f32 %v876_v30, %v534_v49 }
 0x130   :  { %v1387_v12 = vpop.permute.xlu1 %457  ;;  %v1389_v0 = vpop.permute.xlu0 %453  ;;  %v548_v40 = vadd.f32 %v544_v31, %v523_v24  ;;  %v547_v43 = vadd.f32 %v543_v38, %v522_v48 }
 0x134   :  { %v556_v34 = vpop.permute.xlu1 %555  ;;  %v552_v59 = vpop.permute.xlu0 %551 }
 0x135   :  { %v559_v39 = vsel %vm331_vm7, %v552_v59, %v556_v34  ;;  %v561_v7 = vsel %vm331_vm7, %v556_v34, %v552_v59 }
 0x136   :  { %v569_v44 = vmul.f32 %v881_v23, %v561_v7  ;;  %v568_v51 = vmul.f32 %v880_v35, %v559_v39 }
 0x138   :  { %v573_v26 = vadd.f32 %v569_v44, %v548_v40  ;;  %v572_v62 = vadd.f32 %v568_v51, %v547_v43  ;;  %v479_v59 = vpop.permute.xlu1 %478 }
 0x13a   :  { %v590_v17 = vrot.slane %v573_v26, %v1030_v15  ;;  %v611_v46 = vrot.slane %v573_v26, %v1033_v16  ;;  %v627_v25 = vrot.slane %v573_v26, %v1403_v37  ;;  %v643_v61 = vrot.slane %v573_v26, %v1410_v8 }
 0x13b   :  { %v719_v63 = vrot.slane %v573_v26, %v1413_v47  ;;  %v731_v1 = vrot.slane %v573_v26, %v1416_v52  ;;  %v743_v3 = vrot.slane %v573_v26, %v1419_v53  ;;  %v755_v28 = vrot.slane %v573_v26, %v1422_v20 }
 0x13c   :  { %v592_v5 = vmul.f32 %v590_v17, %v1292_v54  ;;  %v613_v11 = vmul.f32 %v611_v46, %v1298_v57  ;;  %v629_v6 = vmul.f32 %v627_v25, %v1296_v56  ;;  %v645_v9 = vmul.f32 %v643_v61, %v1300_v58 }
 0x13d   :  { %v721_v19 = vmul.f32 %v719_v63, %v1292_v54  ;;  %v733_v22 = vmul.f32 %v731_v1, %v1298_v57  ;;  %v745_v27 = vmul.f32 %v743_v3, %v1296_v56  ;;  %v586_v50 = vrot.slane %v572_v62, %v1030_v15  ;;  %v483_v3 = vpop.permute.xlu1 %482 }
 0x13e   :  { %v599_v42 = vadd.f32 %v1294_v55, %v592_v5  ;;  %v607_v29 = vrot.slane %v572_v62, %v1033_v16  ;;  %v623_v49 = vrot.slane %v572_v62, %v1403_v37  ;;  %v715_v34 = vrot.slane %v572_v62, %v1413_v47 }
 0x13f   :  { %v723_v41 = vadd.f32 %v721_v19, %v1294_v55  ;;  %v591_v32 = vmul.f32 %v586_v50, %v1292_v54  ;;  %v727_v35 = vrot.slane %v572_v62, %v1416_v52  ;;  %v757_v38 = vmul.f32 %v755_v28, %v1300_v58  ;;  %v862_v50 = vld [vmem:[%s1615_s3 + $0x50] sm:$0xff] }
 0x140   :  { %v615_v30 = vadd.f32 %v613_v11, %v599_v42  ;;  %v612_v33 = vmul.f32 %v607_v29, %v1298_v57  ;;  %v628_v24 = vmul.f32 %v623_v49, %v1296_v56  ;;  %v639_v7 = vrot.slane %v572_v62, %v1410_v8  ;;  %v858_v42 = vld [vmem:[%s1615_s3 + $0x30] sm:$0xff]  ;;  %v863_v29 = vld [vmem:[%s1615_s3 + $0x58] sm:$0xff] }
 0x141   :  { %v735_v31 = vadd.f32 %v733_v22, %v723_v41  ;;  %v598_v39 = vadd.f32 %v1294_v55, %v591_v32  ;;  %v720_v44 = vmul.f32 %v715_v34, %v1292_v54  ;;  %v732_v48 = vmul.f32 %v727_v35, %v1298_v57  ;;  %v855_v22 = vld [vmem:[%s1615_s3 + $0x98] sm:$0xff] }
 0x142   :  { %v631_v23 = vadd.f32 %v629_v6, %v615_v30  ;;  %v739_v51 = vrot.slane %v572_v62, %v1419_v53  ;;  %v751_v46 = vrot.slane %v572_v62, %v1422_v20  ;;  %v644_v61 = vmul.f32 %v639_v7, %v1300_v58  ;;  %v392_v62 = vld [vmem:[%s1615_s3 + $0x18] sm:$0xff] }
 0x143   :  { %v747_v18 = vadd.f32 %v745_v27, %v735_v31  ;;  %v614_v43 = vadd.f32 %v612_v33, %v598_v39  ;;  %v722_v17 = vadd.f32 %v720_v44, %v1294_v55  ;;  %v391_v55 = vld [vmem:[%s1615_s3 + $0x10] sm:$0xff]  ;;  %v859_v27 = vld [vmem:[%s1615_s3 + $0x38] sm:$0xff]  ;;  %v435_v30 = vsel %vm126_vm2, %v1344_v60, %v1342_v36 }
 0x144   :  { %v1452_v40 = vadd.f32 %v645_v9, %v631_v23  ;;  %v744_v1 = vmul.f32 %v739_v51, %v1296_v56  ;;  %v756_v57 = vmul.f32 %v751_v46, %v1300_v58  ;;  %v386_v56 = vsel %vm46_vm0, %v1304_v4, %v1302_v10  ;;  %v854_v9 = vld [vmem:[%s1615_s3 + $0x90] sm:$0xff]  ;;  %v504_v51 = vpop.permute.xlu0 %503  ;;  %v875_v46 = vld [vmem:[%s1615_s3 + $0xd8] sm:$0xff] }
 0x145   :  { %v1457_v26 = vadd.f32 %v757_v38, %v747_v18  ;;  %v630_v25 = vadd.f32 %v628_v24, %v614_v43  ;;  %v734_v63 = vadd.f32 %v732_v48, %v722_v17  ;;  %v388_v58 = vsel %vm46_vm0, %v1302_v10, %v1304_v4  ;;  %v866_v23 = vld [vmem:[%s1615_s3 + $0x70] sm:$0xff]  ;;  %v867_v24 = vld [vmem:[%s1615_s3 + $0x78] sm:$0xff] }
 0x146   :  { %v410_v10 = vsel %vm85_vm1, %v1308_v13, %v1306_v2  ;;  %v412_v4 = vsel %vm85_vm1, %v1306_v2, %v1308_v13  ;;  %v395_v41 = vmul.f32 %v391_v55, %v388_v58  ;;  %v396_v28 = vmul.f32 %v392_v62, %v386_v56  ;;  %v870_v18 = vld [vmem:[%s1615_s3 + $0xb0] sm:$0xff]  ;;  %v871_v38 = vld [vmem:[%s1615_s3 + $0xb8] sm:$0xff] }
 0x147   :  { %v1463_v5 = vadd.f32 %v644_v61, %v630_v25  ;;  %v746_v54 = vadd.f32 %v744_v1, %v734_v63  ;;  %v437_v2 = vsel %vm126_vm2, %v1342_v36, %v1344_v60  ;;  %v375_v13 = vmul.f32 %v854_v9, %v1236_v21  ;;  %v874_v17 = vld [vmem:[%s1615_s3 + $0xd0] sm:$0xff] }
 0x148   :  { %v376_v49 = vmul.f32 %v855_v22, %v1238_v45  ;;  %v420_v31 = vmul.f32 %v858_v42, %v412_v4  ;;  %v421_v32 = vmul.f32 %v859_v27, %v410_v10  ;;  %v460_v36 = vsel %vm167_vm3, %v1389_v0, %v1387_v12 }
 0x149   :  { %v1466_v11 = vadd.f32 %v756_v57, %v746_v54  ;;  %v462_v21 = vsel %vm167_vm3, %v1387_v12, %v1389_v0  ;;  %v399_v45 = vadd.f32 %v395_v41, %v375_v13  ;;  %v445_v34 = vmul.f32 %v862_v50, %v437_v2  ;;  %v878_v54 = vld [vmem:[%s1615_s3 + $0xf0] sm:$0xff]  ;;  %v879_v57 = vld [vmem:[%s1615_s3 + $0xf8] sm:$0xff] }
 0x14a   :  { %v400_v60 = vadd.f32 %v396_v28, %v376_v49  ;;  %v446_v35 = vmul.f32 %v863_v29, %v435_v30  ;;  %v485_v39 = vsel %vm208_vm4, %v479_v59, %v483_v3  ;;  %v487_v7 = vsel %vm208_vm4, %v483_v3, %v479_v59  ;;  %v882_v41 = vld [vmem:[%s1615_s3 + $0x110] sm:$0xff]  ;;  %v883_v28 = vld [vmem:[%s1615_s3 + $0x118] sm:$0xff] }
 0x14b   :  { %v424_v44 = vadd.f32 %v420_v31, %v399_v45  ;;  %v470_v0 = vmul.f32 %v866_v23, %v462_v21  ;;  %v471_v48 = vmul.f32 %v867_v24, %v460_v36  ;;  %v495_v1 = vmul.f32 %v870_v18, %v485_v39 }
 0x14c   :  { %v425_v12 = vadd.f32 %v421_v32, %v400_v60  ;;  %v496_v3 = vmul.f32 %v871_v38, %v487_v7 }
 0x14d   :  { %v1468_v6 = vpop.permute.xlu1 %665  ;;  %v449_v61 = vadd.f32 %v445_v34, %v424_v44  ;;  %v650_v34 = vpop.permute.xlu0 %649 }
 0x14e   :  { %v450_v63 = vadd.f32 %v446_v35, %v425_v12 }
 0x14f   :  { %v474_v56 = vadd.f32 %v470_v0, %v449_v61 }
 0x150   :  { %v475_v58 = vadd.f32 %v471_v48, %v450_v63 }
 0x151   :  { %v508_v19 = vpop.permute.xlu1 %507  ;;  %v499_v42 = vadd.f32 %v495_v1, %v474_v56 }
 0x152   :  { %v510_v25 = vsel %vm249_vm5, %v504_v51, %v508_v19  ;;  %v512_v59 = vsel %vm249_vm5, %v508_v19, %v504_v51  ;;  %v500_v27 = vadd.f32 %v496_v3, %v475_v58 }
 0x153   :  { %v520_v9 = vmul.f32 %v874_v17, %v510_v25  ;;  %v521_v19 = vmul.f32 %v875_v46, %v512_v59 }
 0x155   :  { %v529_v33 = vpop.permute.xlu1 %528  ;;  %v524_v50 = vadd.f32 %v520_v9, %v499_v42  ;;  %v525_v29 = vadd.f32 %v521_v19, %v500_v27 }
 0x159   :  { %v533_v43 = vpop.permute.xlu1 %532 }
 0x15a   :  { %v535_v55 = vsel %vm290_vm6, %v529_v33, %v533_v43  ;;  %v537_v62 = vsel %vm290_vm6, %v533_v43, %v529_v33 }
 0x15b   :  { %v545_v10 = vmul.f32 %v878_v54, %v535_v55  ;;  %v546_v4 = vmul.f32 %v879_v57, %v537_v62  ;;  %v698_v54 = vpop.permute.xlu0 %697 }
 0x15d   :  { %v554_v22 = vpop.permute.xlu1 %553  ;;  %v549_v49 = vadd.f32 %v545_v10, %v524_v50  ;;  %v550_v31 = vadd.f32 %v546_v4, %v525_v29 }
 0x161   :  { %v558_v30 = vpop.permute.xlu1 %557 }
 0x162   :  { %v560_v2 = vsel %vm331_vm7, %v554_v22, %v558_v30  ;;  %v562_v13 = vsel %vm331_vm7, %v558_v30, %v554_v22 }
 0x163   :  { %v570_v32 = vmul.f32 %v882_v41, %v560_v2  ;;  %v571_v33 = vmul.f32 %v883_v28, %v562_v13 }
 0x165   :  { %v574_v23 = vadd.f32 %v570_v32, %v549_v49  ;;  %v575_v24 = vadd.f32 %v571_v33, %v550_v31  ;;  %v682_v43 = vpop.permute.xlu1 %681 }
 0x167   :  { %v655_v36 = vrot.slane %v574_v23, %v1030_v15  ;;  %v659_v21 = vrot.slane %v575_v24, %v1030_v15  ;;  %v763_v45 = vrot.slane %v574_v23, %v1413_v47  ;;  %v767_v60 = vrot.slane %v575_v24, %v1413_v47 }
 0x168   :  { %v671_v35 = vrot.slane %v574_v23, %v1033_v16  ;;  %v675_v14 = vrot.slane %v575_v24, %v1033_v16  ;;  %v687_v0 = vrot.slane %v574_v23, %v1403_v37  ;;  %v691_v15 = vrot.slane %v575_v24, %v1403_v37 }
 0x169   :  { %v660_v18 = vmul.f32 %v655_v36, %v650_v34  ;;  %v661_v38 = vmul.f32 %v659_v21, %v650_v34  ;;  %v768_v39 = vmul.f32 %v763_v45, %v650_v34  ;;  %v769_v7 = vmul.f32 %v767_v60, %v650_v34  ;;  %v919_v21 = vld [vmem:[%s1610_s0 + $0x8] sm:$0xff] }
 0x16a   :  { %v676_v44 = vmul.f32 %v671_v35, %v1468_v6  ;;  %v677_v12 = vmul.f32 %v675_v14, %v1468_v6  ;;  %v775_v17 = vrot.slane %v574_v23, %v1416_v52  ;;  %v779_v46 = vrot.slane %v575_v24, %v1416_v52 }
 0x16b   :  { %v662_v48 = vadd.f32 %v660_v18, %v1463_v5  ;;  %v663_v47 = vadd.f32 %v661_v38, %v1452_v40  ;;  %v770_v51 = vadd.f32 %v768_v39, %v1466_v11  ;;  %v771_v16 = vadd.f32 %v769_v7, %v1457_v26 }
 0x16c   :  { %v787_v25 = vrot.slane %v574_v23, %v1419_v53  ;;  %v791_v59 = vrot.slane %v575_v24, %v1419_v53  ;;  %v692_v37 = vmul.f32 %v687_v0, %v682_v43  ;;  %v693_v1 = vmul.f32 %v691_v15, %v682_v43 }
 0x16d   :  { %v678_v61 = vadd.f32 %v676_v44, %v662_v48  ;;  %v679_v63 = vadd.f32 %v677_v12, %v663_v47  ;;  %v780_v5 = vmul.f32 %v775_v17, %v1468_v6  ;;  %v781_v40 = vmul.f32 %v779_v46, %v1468_v6 }
 0x16e   :  { %v703_v11 = vrot.slane %v574_v23, %v1410_v8  ;;  %v707_v26 = vrot.slane %v575_v24, %v1410_v8  ;;  %v799_v3 = vrot.slane %v574_v23, %v1422_v20  ;;  %v803_v52 = vrot.slane %v575_v24, %v1422_v20  ;;  %v918_v24 = vld [vmem:[%s1610_s0] sm:$0xff] }
 0x16f   :  { %v782_v57 = vadd.f32 %v780_v5, %v770_v51  ;;  %v783_v55 = vadd.f32 %v781_v40, %v771_v16  ;;  %v792_v53 = vmul.f32 %v787_v25, %v682_v43  ;;  %v793_v62 = vmul.f32 %v791_v59, %v682_v43 }
 0x170   :  { %v694_v56 = vadd.f32 %v692_v37, %v678_v61  ;;  %v695_v58 = vadd.f32 %v693_v1, %v679_v63  ;;  %v804_v22 = vmul.f32 %v799_v3, %v698_v54  ;;  %v805_v42 = vmul.f32 %v803_v52, %v698_v54 }
 0x171   :  { %v794_v9 = vadd.f32 %v792_v53, %v782_v57  ;;  %v795_v19 = vadd.f32 %v793_v62, %v783_v55  ;;  %v708_v6 = vmul.f32 %v703_v11, %v698_v54  ;;  %v709_v27 = vmul.f32 %v707_v26, %v698_v54 }
 0x173   :  { %v806_v10 = vadd.f32 %v804_v22, %v794_v9  ;;  %v807_v4 = vadd.f32 %v805_v42, %v795_v19  ;;  %v710_v8 = vadd.f32 %v708_v6, %v694_v56  ;;  %v711_v41 = vadd.f32 %v709_v27, %v695_v58 }
 0x175   :  { %v810_v28 = vrot.slane %v806_v10, 4  ;;  %v811_v20 = vrot.slane %v807_v4, 4 }
 0x177   :  { %v815_v50 = vsel %vm814_vm8, %v710_v8, %v810_v28  ;;  %v816_v29 = vsel %vm814_vm8, %v711_v41, %v811_v20 }
 0x178   :  { %v884_v30 = vmul.f32 -1.442695, %v815_v50  ;;  %v885_v2 = vmul.f32 -1.442695, %v816_v29 }
 0x17a   :  { %910 = vpow2.f32 %v884_v30 }
 0x17b   :  { %912 = vpow2.f32 %v885_v2 }
 0x184   :  { %v911_v13 = vpop.eup %910 }
 0x185   :  { %v913_v49 = vpop.eup %912  ;;  %v823_v31 = vadd.f32 1.0, %v911_v13 }
 0x186   :  { %v824_v32 = vadd.f32 1.0, %v913_v49 }
 0x187   :  { %914 = vrcp.f32 %v823_v31 }
 0x188   :  { %916 = vrcp.f32 %v824_v32 }
 0x191   :  { %v915_v33 = vpop.eup %914 }
 0x192   :  { %v917_v23 = vpop.eup %916  ;;  %v829_v36 = vmul.f32 %v918_v24, %v915_v33 }
 0x193   :  { %v830_v45 = vmul.f32 %v919_v21, %v917_v23 }
 0x194   :  { %831 = vst [vmem:[%s1616_s6] sm:$0xff] %v829_v36 }
 0x195   :  { %832 = vst [vmem:[%s1616_s6 + $0x8] sm:$0xff] %v830_v45 }

</bundles_post_ra>
